<compile_context>
chip_gen: v7x
topology: tpu7x:2x2x1
jax: 0.10.0
libtpu: 0.0.40
codegen_flags: <defaults>
</compile_context>

<pallas_src>
import functools
import math

import jax
import jax.numpy as jnp
from jax.experimental import pallas as pl
from jax.experimental.pallas import tpu as pltpu

_VMEM_INPUT_BUDGET = 24 * 1024 * 1024   # 2 inputs x 2 pipeline buffers


def _kld_kernel(mu_ref, logvar_ref, colsum_ref, *, batch_rows, tile_rows,
                steps_per_core, need_mask):
    """Accumulates per-column sums of s = logvar - mu^2 - exp(logvar)."""
    core = pl.program_id(0)   # TensorCore-split axis (size 1 on 1-TC chips)
    step = pl.program_id(1)   # batch-block reduction axis

    # Per-core resident accumulator: init on the first step of this core.
    @pl.when(step == 0)
    def _():
        colsum_ref[...] = jnp.zeros_like(colsum_ref)

    mu = mu_ref[...].astype(jnp.float32)
    lv = logvar_ref[...].astype(jnp.float32)

    # klds = -0.5 * (1 + s); the "+1" and "*-0.5" live in the JAX epilogue.
    s = lv - mu * mu - jnp.exp(lv)

    def _accumulate(vals):
        colsum_ref[...] += jnp.sum(vals, axis=0)[None, None, :]

    if need_mask:
        start = (core * steps_per_core + step) * tile_rows
        rows_valid = batch_rows - start          # <= 0 for fully-padded blocks
        is_full = rows_valid >= tile_rows

        @pl.when(is_full)
        def _():
            _accumulate(s)

        @pl.when(jnp.logical_not(is_full))
        def _():
            # Invalid rows contribute s = -1 (zero-KL point under the folded
            # formulation); the epilogue adds +1 per accumulated row slot,
            # so they contribute exactly 0.
            row_idx = jax.lax.broadcasted_iota(jnp.int32, s.shape, 0)
            _accumulate(jnp.where(row_idx < rows_valid, s, -1.0))
    else:
        _accumulate(s)


def _tpu_layout():
    """Return (num_tensorcores, vmem_capacity_bytes), conservative fallbacks."""
    ncores, vmem_cap = 1, 128 * 1024 * 1024
    try:
        info = pltpu.get_tpu_info()
    except Exception:
        return ncores, vmem_cap
    cap = getattr(info, "vmem_capacity_bytes", None)
    if isinstance(cap, int) and cap > 0:
        vmem_cap = cap
    for name in ("num_cores", "num_tensorcores", "tensorcore_count",
                 "core_count", "num_cores_per_chip", "cores_per_chip"):
        val = getattr(info, name, None)
        if isinstance(val, int) and 1 <= val <= 4:
            ncores = val
            break
    return ncores, vmem_cap


def _pick_tile_rows(batch_rows, ncols, itemsize, budget_bytes):
    """Largest batch tile s.t. 2 inputs x 2 pipeline buffers fit the budget.

    Honest VMEM model: lane-padded columns (ceil(ncols/128)*128) at the input
    itemsize (bf16 inputs double the tile rows). No artificial row cap.
    """
    lane_cols = -(-ncols // 128) * 128
    bytes_per_row = 2 * 2 * lane_cols * itemsize
    tb = int(budget_bytes // bytes_per_row)
    if tb >= batch_rows:
        return batch_rows
    tb = max(8, tb - (tb % 8))
    return min(tb, batch_rows)


def kl_divergence(mu, logvar, *, tile_rows=None):
    """Pallas implementation of KL_Divergence.forward.

    Returns (total_kld, dimension_wise_kld, mean_kld) with shapes
    ((1,), (D,), (1,)) in float32, matching the PyTorch module.
    """
    assert mu.shape[0] != 0
    if mu.ndim == 4:
        mu = jnp.reshape(mu, (mu.shape[0], mu.shape[1]))
    if logvar.ndim == 4:
        logvar = jnp.reshape(logvar, (logvar.shape[0], logvar.shape[1]))
    assert mu.shape == logvar.shape and mu.ndim == 2
    B, D = mu.shape

    # ---- lane-dense repack for narrow latent dims (D < 128) ----------------
    # (B, D) -> (B/g, g*D) with g*D % 128 == 0, so every vreg lane is used.
    g = 128 // math.gcd(D, 128) if D < 128 else 1
    if g > 1:
        b_pad = -(-B // g) * g
        if b_pad != B:
            # Padded rows are zeros -> s = -1, cancelled exactly in the epilogue.
            mu = jnp.pad(mu, ((0, b_pad - B), (0, 0)))
            logvar = jnp.pad(logvar, ((0, b_pad - B), (0, 0)))
        Bp, Dp = b_pad // g, g * D
        mu = jnp.reshape(mu, (Bp, Dp))
        logvar = jnp.reshape(logvar, (Bp, Dp))
    else:
        Bp, Dp = B, D

    ncores_hw, vmem_cap = _tpu_layout()
    itemsize = max(mu.dtype.itemsize, logvar.dtype.itemsize)
    vmem_limit = (48 if vmem_cap >= 96 * 1024 * 1024 else 32) * 1024 * 1024

    # ---- batch tile (multiple of 8, or the full packed batch) --------------
    if tile_rows is not None:
        TB = int(tile_rows)
        TB = Bp if TB >= Bp else min(max(8, TB - (TB % 8)), Bp)
    else:
        TB = _pick_tile_rows(Bp, Dp, itemsize, _VMEM_INPUT_BUDGET)
    # TODO(synk): add a D-tiling grid axis for latent dims so wide that even
    # an 8-row tile exceeds the VMEM budget (Dp > ~1.5M columns).

    total_blocks = -(-Bp // TB)
    ncores = min(ncores_hw, total_blocks, 2)

    def _launch(nc):
        n_steps = -(-total_blocks // nc)
        n_acc = nc * n_steps * TB              # row slots accumulated per column
        need_mask = (n_acc != Bp)

        if nc * n_steps == total_blocks:
            def in_index_map(c, s):
                return (c * n_steps + s, 0)
        else:
            last_block = total_blocks - 1

            def in_index_map(c, s):
                # Over-allocated trailing blocks are clamped to a valid block;
                # the kernel masks all their rows (rows_valid <= 0).
                return (jnp.minimum(c * n_steps + s, last_block), 0)

        kernel = functools.partial(
            _kld_kernel, batch_rows=Bp, tile_rows=TB,
            steps_per_core=n_steps, need_mask=need_mask)

        core_sem = (getattr(pltpu, "CORE_PARALLEL", pltpu.PARALLEL)
                    if nc > 1 else pltpu.ARBITRARY)

        out = pl.pallas_call(
            kernel,
            out_shape=jax.ShapeDtypeStruct((nc, 1, Dp), jnp.float32),
            grid=(nc, n_steps),
            in_specs=[
                pl.BlockSpec((TB, Dp), in_index_map),
                pl.BlockSpec((TB, Dp), in_index_map),
            ],
            # Per-core resident accumulator: same block for every `step`.
            out_specs=pl.BlockSpec((1, 1, Dp), lambda c, s: (c, 0, 0)),
            compiler_params=pltpu.CompilerParams(
                dimension_semantics=(core_sem, pltpu.ARBITRARY),
                vmem_limit_bytes=vmem_limit,
            ),
            cost_estimate=pl.CostEstimate(
                flops=5 * Bp * Dp,
                transcendentals=Bp * Dp,
                bytes_accessed=2 * Bp * Dp * itemsize + nc * Dp * 4,
            ),
        )(mu, logvar)
        return out, n_acc

    try:
        partial_sums, n_acc = _launch(ncores)
    except Exception:
        if ncores == 1:
            raise
        # Core-parallel split rejected on this chip/runtime: serial fallback.
        partial_sums, n_acc = _launch(1)

    # ---- tiny epilogue in plain JAX -----------------------------------------
    colsum_s = jnp.sum(partial_sums[:, 0, :], axis=0)            # (Dp,)
    # Fold the "+1" and "*-0.5" back in: every accumulated row slot (valid,
    # padded or masked) contributes +1 here; masked/padded slots carried -1.
    klds_col = -0.5 * (float(n_acc) + colsum_s)                  # (Dp,)
    if g > 1:
        klds_col = jnp.sum(jnp.reshape(klds_col, (g, D)), axis=0)  # (D,)
    total_sum = jnp.sum(klds_col)
    inv_b = 1.0 / B
    dimension_wise_kld = klds_col * inv_b                        # klds.mean(0)
    total_kld = jnp.reshape(total_sum * inv_b, (1,))             # sum(1).mean(0)
    mean_kld = jnp.reshape(total_sum * (1.0 / (B * D)), (1,))    # mean(1).mean(0)
    return total_kld, dimension_wise_kld, mean_kld


def _reference(mu, logvar):
    if mu.ndim == 4:
        mu = mu.reshape(mu.shape[0], mu.shape[1])
    if logvar.ndim == 4:
        logvar = logvar.reshape(logvar.shape[0], logvar.shape[1])
    klds = -0.5 * (1.0 + logvar - mu ** 2 - jnp.exp(logvar))
    total_kld = klds.sum(1).mean(0, keepdims=True)
    dimension_wise_kld = klds.mean(0)
    mean_kld = klds.mean(1).mean(0, keepdims=True)
    return total_kld, dimension_wise_kld, mean_kld


if __name__ == "__main__":
    key = jax.random.PRNGKey(0)
    k_mu, k_lv = jax.random.split(key)

    # Primary case: encoder-style 4-D input (B, D, 1, 1), small shapes.
    B, D = 8, 32
    mu = jax.random.normal(k_mu, (B, D, 1, 1), dtype=jnp.float32)
    logvar = 0.1 * jax.random.normal(k_lv, (B, D, 1, 1), dtype=jnp.float32)

    total, dimwise, mean = kl_divergence(mu, logvar)
    jax.block_until_ready((total, dimwise, mean))

    ref_total, ref_dimwise, ref_mean = _reference(mu, logvar)
    assert total.shape == (1,) and dimwise.shape == (D,) and mean.shape == (1,)
    assert jnp.allclose(total, ref_total, rtol=1e-5, atol=1e-5)
    assert jnp.allclose(dimwise, ref_dimwise, rtol=1e-5, atol=1e-5)
    assert jnp.allclose(mean, ref_mean, rtol=1e-5, atol=1e-5)

    # Secondary case: ragged batch + tiny forced tile to exercise batch tiling,
    # the (possibly clamped) index_map and the ragged-block masking path.
    B2, D2 = 37, 128
    k1, k2 = jax.random.split(jax.random.PRNGKey(1))
    mu2 = jax.random.normal(k1, (B2, D2), dtype=jnp.float32)
    lv2 = 0.2 * jax.random.normal(k2, (B2, D2), dtype=jnp.float32)

    t2, d2, m2 = kl_divergence(mu2, lv2, tile_rows=8)
    jax.block_until_ready((t2, d2, m2))
    rt2, rd2, rm2 = _reference(mu2, lv2)
    assert t2.shape == (1,) and d2.shape == (D2,) and m2.shape == (1,)
    assert jnp.allclose(t2, rt2, rtol=1e-4, atol=1e-4)
    assert jnp.allclose(d2, rd2, rtol=1e-4, atol=1e-4)
    assert jnp.allclose(m2, rm2, rtol=1e-4, atol=1e-4)

    # Third case: narrow D with a ragged batch (exercises lane-dense repack
    # with tail padding) and bf16 inputs (exercises the itemsize-aware model).
    B3, D3 = 21, 32
    k3, k4 = jax.random.split(jax.random.PRNGKey(2))
    mu3 = jax.random.normal(k3, (B3, D3), dtype=jnp.bfloat16)
    lv3 = (0.2 * jax.random.normal(k4, (B3, D3))).astype(jnp.bfloat16)

    t3, d3, m3 = kl_divergence(mu3, lv3)
    jax.block_until_ready((t3, d3, m3))
    rt3, rd3, rm3 = _reference(mu3.astype(jnp.float32), lv3.astype(jnp.float32))
    assert t3.shape == (1,) and d3.shape == (D3,) and m3.shape == (1,)
    assert jnp.allclose(t3, rt3, rtol=1e-3, atol=1e-3)
    assert jnp.allclose(d3, rd3, rtol=1e-3, atol=1e-3)
    assert jnp.allclose(m3, rm3, rtol=1e-3, atol=1e-3)

    print("KERNEL_OK")
</pallas_src>

<mosaic_0001>
module attributes {stable_mosaic.version = 11 : i64} {
  func.func @_kld_kernel(%arg0: i32, %arg1: i32, %arg2: memref<2x128xf32, #tpu.memory_space<vmem>>, %arg3: memref<2x128xf32, #tpu.memory_space<vmem>>, %arg4: memref<1x1x128xf32, #tpu.memory_space<vmem>>) attributes {dimension_semantics = [#tpu.dimension_semantics<arbitrary>, #tpu.dimension_semantics<arbitrary>], iteration_bounds = array<i64: 1, 1>, scalar_prefetch = 0 : i64, scratch_operands = 0 : i64, tpu.core_type = #tpu.core_type<tc>, window_params = [{transform_indices = @transform_0, window_bounds = array<i64: 2, 128>}, {transform_indices = @transform_1, window_bounds = array<i64: 2, 128>}, {transform_indices = @transform_2, window_bounds = array<i64: 1, 1, 128>}]} {
    %c0_i32 = arith.constant 0 : i32
    %0 = arith.cmpi eq, %arg1, %c0_i32 : i32
    %1 = arith.extui %0 : i1 to i32
    %c0_i32_0 = arith.constant 0 : i32
    %2 = arith.cmpi ne, %1, %c0_i32_0 : i32
    scf.if %2 {
      %cst_10 = arith.constant 0.000000e+00 : f32
      %14 = vector.broadcast %cst_10 : f32 to vector<1x1x128xf32>
      %c0_11 = arith.constant 0 : index
      %c0_12 = arith.constant 0 : index
      %c0_13 = arith.constant 0 : index
      %15 = vector.load %arg4[%c0_11, %c0_12, %c0_13] : memref<1x1x128xf32, #tpu.memory_space<vmem>>, vector<1x1x128xf32>
      tpu.vector_store %arg4[%c0_11, %c0_12, %c0_13], %14 {strides = array<i32>} : memref<1x1x128xf32, #tpu.memory_space<vmem>>, vector<1x1x128xf32>,
    } else {
    }
    %c0 = arith.constant 0 : index
    %c0_1 = arith.constant 0 : index
    %3 = vector.load %arg2[%c0, %c0_1] : memref<2x128xf32, #tpu.memory_space<vmem>>, vector<2x128xf32>
    %c0_2 = arith.constant 0 : index
    %c0_3 = arith.constant 0 : index
    %4 = vector.load %arg3[%c0_2, %c0_3] : memref<2x128xf32, #tpu.memory_space<vmem>>, vector<2x128xf32>
    %5 = arith.mulf %3, %3 : vector<2x128xf32>
    %6 = arith.subf %4, %5 : vector<2x128xf32>
    %7 = math.exp %4 : vector<2x128xf32>
    %8 = arith.subf %6, %7 : vector<2x128xf32>
    %c0_4 = arith.constant 0 : index
    %c0_5 = arith.constant 0 : index
    %c0_6 = arith.constant 0 : index
    %9 = vector.load %arg4[%c0_4, %c0_5, %c0_6] : memref<1x1x128xf32, #tpu.memory_space<vmem>>, vector<1x1x128xf32>
    %cst = arith.constant dense<0.000000e+00> : vector<128xf32>
    %10 = vector.multi_reduction <add>, %8, %cst [0] : vector<2x128xf32> to vector<128xf32>
    %11 = vector.shape_cast %10 : vector<128xf32> to vector<1x1x128xf32>
    %12 = arith.addf %9, %11 : vector<1x1x128xf32>
    %c0_7 = arith.constant 0 : index
    %c0_8 = arith.constant 0 : index
    %c0_9 = arith.constant 0 : index
    %13 = vector.load %arg4[%c0_7, %c0_8, %c0_9] : memref<1x1x128xf32, #tpu.memory_space<vmem>>, vector<1x1x128xf32>
    tpu.vector_store %arg4[%c0_7, %c0_8, %c0_9], %12 {strides = array<i32>} : memref<1x1x128xf32, #tpu.memory_space<vmem>>, vector<1x1x128xf32>,
    return
  }
  func.func @transform_0(%arg0: i32, %arg1: i32) -> (i32, i32) {
    %c1_i32 = arith.constant 1 : i32
    %0 = arith.muli %arg0, %c1_i32 : i32
    %1 = arith.addi %0, %arg1 : i32
    %c0_i32 = arith.constant 0 : i32
    %c0_i32_0 = arith.constant 0 : i32
    return %1, %c0_i32 : i32, i32
  }
  func.func @transform_1(%arg0: i32, %arg1: i32) -> (i32, i32) {
    %c1_i32 = arith.constant 1 : i32
    %0 = arith.muli %arg0, %c1_i32 : i32
    %1 = arith.addi %0, %arg1 : i32
    %c0_i32 = arith.constant 0 : i32
    %c0_i32_0 = arith.constant 0 : i32
    return %1, %c0_i32 : i32, i32
  }
  func.func @transform_2(%arg0: i32, %arg1: i32) -> (i32, i32, i32) {
    %c0_i32 = arith.constant 0 : i32
    %c0_i32_0 = arith.constant 0 : i32
    %c0_i32_1 = arith.constant 0 : i32
    return %arg0, %c0_i32, %c0_i32_0 : i32, i32, i32
  }
}

</mosaic_0001>

<bundles_post_ra>
// kernel: tpu_custom_call.1
= control target key start
LH: loop header
LB: loop body
LE: loop exit
PB: predicated region body
PF: predicated region fallthrough
CT: control target
= control target key end

     0   :  { %7 = vsyncpa [#allocation3], 0  ;;  %s187_s0 = inlined_call_operand.hbm [shape: f32[2,128], index: 0, kind: input, shape index: {}]   ;;  %s188_s1 = inlined_call_operand.vmem [shape: f32[2,128], index: 1, kind: input, shape index: {}]   ;;  %s189_s2 = inlined_call_operand.hbm [shape: f32[1,1,128], index: 2, kind: output, shape index: {}]  }
   0x1   :  { %8 = vsyncpa [#allocation4], 0  ;;  %s142_s9 = smov [#allocation2]   ;;  %s94_s13 = scalar_lea.hbm %s187_s0, 32 }
   0x2   :  { %s18_s10 = sshll.u32 %s142_s9, 4  ;;  %p95_p0 = scmp.ne.s32.totalorder %s187_s0, %s94_s13  ;;  %s19_s10 = int_to_ptr.vmem [resolvable:$true] %s18_s10 }
   0x3   :  { %p98_p1 = scmp.lt.u32.totalorder %s94_s13, %s187_s0 }
   0x5   :  { %p100_p2 = pnand %p98_p1, %p95_p0 }
   0x7   :  { %103 = shalt.err (!%p100_p2)
}
   0x8   :  { %s104_s18 = scalar_lea.vmem %s19_s10, 32  ;;  %p109_p4 = scmp.lt.s32.totalorder %s19_s10, %s19_s10 }
   0x9   :  { %p105_p3 = scmp.ne.s32.totalorder %s19_s10, %s104_s18  ;;  %p110_p5 = scmp.lt.s32.totalorder %s104_s18, %s104_s18 }
   0xb   :  { %p111_p6 = por %p110_p5, %p109_p4 }
   0xd   :  { %p112_p7 = pnand %p111_p6, %p105_p3 }
   0xf   :  { %115 = shalt.err (!%p112_p7)
}
  0x10   :  { %21 = dma.hbm_to_vmem [thread:$0]  %s187_s0, 32, %s19_s10, [#allocation3]  }
  0x11   :  { %138 = dma.done.wait [#allocation3], 32  }
  0x12   :  { %139 = vsyncadd [#allocation3], 4294967264  ;;  %v143_v0 = vmov 0.0   ;;  %v51_v1 = vld [vmem:[%s188_s1] sm:$0x3]  ;;  %vm58_vm0 = vcmask 1041408  }
  0x13   :  { %49 = vst [vmem:[#allocation5] sm:$0x1] %v143_v0  ;;  %v54_v2 = vmul.f32 1.442695, %v51_v1  ;;  %v50_v3 = vld [vmem:[#allocation2] sm:$0x3] }
  0x14   :  { %v52_v4 = vmul.f32 %v50_v3, %v50_v3  ;;  %s144_s0 = smov [#allocation5]  }
  0x15   :  { %92 = vpow2.f32 %v54_v2  ;;  %s74_s23 = sshll.u32 %s144_s0, 4  ;;  %s75_s23 = int_to_ptr.vmem [resolvable:$true] %s74_s23 }
  0x16   :  { %v53_v5 = vsub.f32 %v51_v1, %v52_v4  ;;  %s116_s1 = scalar_lea.vmem %s75_s23, 16  ;;  %s120_s24 = scalar_lea.vmem %s75_s23, 32 }
  0x17   :  { %p117_p8 = scmp.ne.s32.totalorder %s75_s23, %s116_s1  ;;  %p121_p9 = scmp.lt.s32.totalorder %s75_s23, %s75_s23 }
  0x18   :  { %p122_p10 = scmp.lt.s32.totalorder %s120_s24, %s116_s1 }
  0x1a   :  { %v57_v14 = vld [vmem:[#allocation5] sm:$0x1]  ;;  %p123_p11 = por %p122_p10, %p121_p9 }
  0x1c   :  { %p124_p12 = pnand %p123_p11, %p117_p8 }
  0x1f   :  { %v93_v6 = vpop.eup %92 }
  0x20   :  { %v56_v7 = vsub.f32 %v53_v5, %v93_v6 }
  0x22   :  { %v59_v8 = vsel %vm58_vm0, %v56_v7, 0.0 }
  0x23   :  { %v60_v9 = vrot.slane %v59_v8, 4 }
  0x25   :  { %v61_v10 = vadd.f32 %v60_v9, %v59_v8 }
  0x27   :  { %v62_v11 = vrot.slane %v61_v10, 2 }
  0x29   :  { %v63_v12 = vadd.f32 %v62_v11, %v61_v10 }
  0x2b   :  { %v64_v13 = vrot.slane %v63_v12, 1 }
  0x2d   :  { %v65_v15 = vadd.f32 %v64_v13, %v63_v12 }
  0x2f   :  { %v66_v16 = vadd.f32 %v65_v15, %v57_v14 }
  0x31   :  { %67 = vst [vmem:[#allocation5] sm:$0x1] %v66_v16 }
  0x32   :  { %127 = shalt.err (!%p124_p12)
}
  0x33   :  { %s128_s27 = scalar_lea.hbm %s189_s2, 16 }
  0x34   :  { %p129_p13 = scmp.ne.s32.totalorder %s189_s2, %s128_s27  ;;  %p132_p0 = scmp.lt.u32.totalorder %s128_s27, %s189_s2 }
  0x36   :  { %p134_p1 = pnand %p132_p0, %p129_p13 }
  0x38   :  { %137 = shalt.err (!%p134_p1)
}
  0x39   :  { %77 = dma.vmem_to_hbm [thread:$0]  %s75_s23, 16, %s189_s2, [#allocation4]  }
  0x3a   :  { %140 = dma.done.wait [#allocation4], 16  }
  0x3b   :  { %141 = vsyncadd [#allocation4], 4294967280 }
  0x3c   :  { %81 = vsyncpa [#allocation3], 1 }
  0x3d   :  { %82 = vsyncpa [#allocation4], 1 }

</bundles_post_ra>
